<compile_context>
chip_gen: v7x
topology: tpu7x:2x2x1
jax: 0.10.0
libtpu: 0.0.40
codegen_flags: <defaults>
</compile_context>

<pallas_src>
import jax
import jax.numpy as jnp
from jax.experimental import pallas as pl
from jax.experimental.pallas import tpu as pltpu


def _round_up(x, m):
    return ((x + m - 1) // m) * m


# ---------------------------------------------------------------------------
# Pallas kernel: per-row EF_conversion math on pre-composed (D,D) weights.
# ---------------------------------------------------------------------------
def ief_kernel(z_ref, e_ref, expw_ref, wz_ref, we_ref, wsb_ref, one_ref,
               wlt_ref, bl_ref, suff_ref, out_ref):
    f32 = jnp.float32
    tb, D = z_ref.shape                      # rows per tile (mult of 8), latent dim
    mm = lambda a, b: jnp.dot(a, b, preferred_element_type=f32)   # DEFAULT MXU precision
    # sigmoid with the divide on the EUP (approx vrcp) instead of VALU Newton steps
    sig = lambda x: pl.reciprocal(1.0 + jnp.exp(-x), approx=True)

    # bf16-resident tiny weights, cast to f32 once per tile
    expw = expw_ref[...].astype(f32)
    wz = wz_ref[...].astype(f32)
    we = we_ref[...].astype(f32)
    wsb = wsb_ref[...].astype(f32)           # (ws1@ws2) * batch, pre-scaled in wrapper
    one = one_ref[...].astype(f32)
    wlt = wlt_ref[...].astype(f32)
    bl = bl_ref[...]                          # (1, D) f32
    suff = suff_ref[...]                      # (1, D) f32 pre-reduced posterior term

    # ---- Invert_Equiv_Func: new_z / new_eps
    new_z = mm(z_ref[...], expw)
    new_e = mm(e_ref[...], expw)

    # ---- EF_conversion: theta_z / theta_eps
    theta_z = mm(new_z, wz)
    theta_e = mm(new_e, we)
    tz_sum = jnp.sum(theta_z, axis=-1, keepdims=True)
    te_sum = jnp.sum(theta_e, axis=-1, keepdims=True)

    # ---- kl_loss
    lnz = sig(sig(mm(theta_z, one)))          # sigmoid-of-sigmoid as in the source
    lne = sig(sig(mm(theta_e, one)))
    pz = lnz * (1.0 - lnz)
    pe = lne * (1.0 - lne)
    gz = mm(pz, one)
    ge = mm(pe, one)
    sgz = sig(gz)                             # log_norm(lnz*(1-lnz))
    sge = sig(ge)

    kl = lne - te_sum * ge - lnz + tz_sum * gz

    # ---- ef_loss: kl-gradient part
    nzl = sig(mm(mm(gz, wz), one))            # nabla_z(log_norm_z)
    nel = sig(mm(mm(ge, we), one))            # nabla_eps(log_norm_eps)
    az = mm(sgz, wz)                          # z_pg(log_norm(lnz*(1-lnz)))
    ae = mm(sge, we)

    tzl = nzl * lnz
    tel = nel * lne
    r1 = sig(mm(nzl - tzl, one))              # log_norm(nabla_z * (1 - lnz))
    r2 = sig(mm(tzl, one))                    # log_norm(nabla_z * lnz)
    r3 = sig(mm(nel - tel, one))
    r4 = sig(mm(tel, one))

    nz_kl = -nzl + az + tz_sum * (r1 - r2)
    ne_kl = nel - ae - te_sum * (r3 - r4)
    nz_kl_l = mm(nz_kl, wlt) + bl             # lambda_ Linear
    ne_kl_l = mm(ne_kl, wlt) + bl

    # ---- ef_loss: posterior-gradient part
    nz_post = suff + mm(theta_z, wsb) - nzl
    ne_post = 2.0 * tz_sum * theta_e

    rnorm = lambda x: jnp.sqrt(jnp.sum(x * x, axis=-1, keepdims=True))
    ef = rnorm(nz_kl_l + nz_post) + rnorm(ne_kl_l + ne_post) + rnorm(kl)   # (tb, 1)

    # ---- single fused, lane-dense output: [new_z | new_eps | kl | ef-fill]
    ef_fill = jnp.broadcast_to(ef, (tb, out_ref.shape[1] - 3 * D))
    out_ref[...] = jnp.concatenate([new_z, new_e, kl, ef_fill], axis=-1)


# ---------------------------------------------------------------------------
# Wrapper: hoisted precompute + batch-tiled pallas_call
# ---------------------------------------------------------------------------
def invert_equiv_forward(latent_z, eps, params, *, training=True,
                         max_tile=1024, min_tiles=2):
    B, D = latent_z.shape
    f32 = jnp.float32
    hp = jax.lax.Precision.HIGHEST
    hmm = lambda a, b: jnp.matmul(a, b, precision=hp)   # one-time tiny precompute: exact

    # --- exp_w = expm(sym(w1)) @ expm(sym(w2))
    # TODO(synk): torch.matrix_exp has no Pallas primitive; computed with expm in XLA.
    s1 = 0.5 * (params["w1"] + params["w1"].T)
    s2 = 0.5 * (params["w2"] + params["w2"].T)
    exp_w = hmm(jax.scipy.linalg.expm(s1), jax.scipy.linalg.expm(s2))

    # --- log_norm training-mode masking + one_matrix (batch-independent)
    lw1, lw2 = params["lw1"], params["lw2"]
    if training:
        a1 = jnp.abs(lw1)
        lw1 = jnp.where(a1 >= jnp.mean(a1), lw1, 0.0)
        a2 = jnp.abs(lw2)
        lw2 = jnp.where(a2 >= jnp.mean(a2), lw2, 0.0)
    one = hmm(lw1, lw2)

    # --- pre-composed sub_layers / Linear weights
    wz = hmm(params["wz1"], params["wz2"])
    we = hmm(params["we1"], params["we2"])
    ws = hmm(params["ws1"], params["ws2"])
    wl_t = params["wl"].T
    bl = params["bl"].astype(f32)

    # --- batch reduction removed by linearity: ((sum_b z) @ exp_w @ ws) @ wz
    z_sum = jnp.sum(latent_z, axis=0, keepdims=True)
    suff_term = hmm(hmm(hmm(z_sum, exp_w), ws), wz).astype(f32)      # (1, D)
    ws_b = ws * float(B)                                             # fold `* batch`

    # bf16 storage for the resident (D,D) weights (MXU runs DEFAULT precision anyway)
    wdt = jnp.bfloat16
    exp_w, wz, we, ws_b, one, wl_t = (x.astype(wdt)
                                      for x in (exp_w, wz, we, ws_b, one, wl_t))

    # --- batch tiling: fix the tile count first (>= 2 so megacore can split the
    #     batch axis), then balance rows per tile, rounded to 8 sublanes.
    n_tiles = max(min_tiles, pl.cdiv(B, max_tile))
    TB = _round_up(pl.cdiv(B, n_tiles), 8)
    B_pad = n_tiles * TB
    zp = jnp.pad(latent_z.astype(f32), ((0, B_pad - B), (0, 0)))
    ep = jnp.pad(eps.astype(f32), ((0, B_pad - B), (0, 0)))

    W = _round_up(3 * D + 1, 128)            # fused lane-dense output width

    tile_spec = pl.BlockSpec((TB, D), lambda i: (i, 0))
    out_spec = pl.BlockSpec((TB, W), lambda i: (i, 0))
    # grid-constant weights: single-buffered (double-buffering them is pure waste)
    wspec = pl.BlockSpec((D, D), lambda i: (0, 0), pipeline_mode=pl.Buffered(1))
    vspec = pl.BlockSpec((1, D), lambda i: (0, 0), pipeline_mode=pl.Buffered(1))

    # VMEM budget: double-buffered I/O tiles + single-buffered bf16 weights +
    # in-kernel temporaries (~24 live TBxD f32 arrays) + slack; clamp to the
    # chip's physical VMEM (v5e/v6e 128 MiB, v7x 64 MiB per core).
    vmem_est = (2 * 2 * TB * D * 4           # z, eps tiles (x2 buffers)
                + 2 * TB * W * 4             # fused output slab (x2 buffers)
                + 6 * D * D * 2 + 2 * D * 4  # bf16 weights + f32 vectors
                + 24 * TB * D * 4            # kernel temporaries
                + (4 << 20))
    try:
        phys_vmem = pltpu.get_tpu_info().vmem_capacity_bytes
    except Exception:
        phys_vmem = 64 << 20                 # conservative fallback (v7x per-core)
    vmem_limit = int(min(max(vmem_est, 32 << 20), int(phys_vmem * 0.7)))

    slab = pl.pallas_call(
        ief_kernel,
        out_shape=jax.ShapeDtypeStruct((B_pad, W), f32),
        grid_spec=pltpu.PrefetchScalarGridSpec(
            num_scalar_prefetch=0,
            grid=(n_tiles,),
            in_specs=[tile_spec, tile_spec,                  # z, eps
                      wspec, wspec, wspec, wspec,            # exp_w, wz, we, ws*B
                      wspec, wspec,                          # one_matrix, wl_t
                      vspec, vspec],                         # bl, suff_term
            out_specs=out_spec),
        compiler_params=pltpu.CompilerParams(
            dimension_semantics=("parallel",),
            vmem_limit_bytes=vmem_limit),
    )(zp, ep, exp_w, wz, we, ws_b, one, wl_t, bl, suff_term)

    # glue: drop padded rows, un-fuse the slab, restore PyTorch output shapes
    new_z = slab[:B, 0:D]
    new_eps = slab[:B, D:2 * D]
    kl = slab[:B, 2 * D:3 * D].reshape(B, 1, D)      # kl_err (B, 1, D)
    ef = slab[:B, 3 * D:3 * D + 1]                   # ef_err (B, 1)
    return new_z, new_eps, ef, kl


# ---------------------------------------------------------------------------
# Pure-JAX PyTorch-faithful reference (un-composed weights, batched matmul
# forms) used only for correctness checking.
# ---------------------------------------------------------------------------
def torch_ref_forward(latent_z, eps, params, *, training=True):
    P = jax.lax.Precision.HIGHEST
    mm = lambda a, b: jnp.matmul(a, b, precision=P)
    sig = jax.nn.sigmoid

    s1 = 0.5 * (params["w1"] + params["w1"].T)
    s2 = 0.5 * (params["w2"] + params["w2"].T)
    exp_w = mm(jax.scipy.linalg.expm(s1), jax.scipy.linalg.expm(s2))
    new_z = mm(latent_z, exp_w)
    new_eps = mm(eps, exp_w)

    lw1, lw2 = params["lw1"], params["lw2"]
    if training:
        a1 = jnp.abs(lw1)
        lw1 = jnp.where(a1 >= jnp.mean(a1), lw1, 0.0)
        a2 = jnp.abs(lw2)
        lw2 = jnp.where(a2 >= jnp.mean(a2), lw2, 0.0)
    one_matrix = mm(lw1, lw2)
    log_norm = lambda x: sig(mm(mm(x, lw1), lw2))
    sub = lambda x, a, b: mm(mm(x, a), b)
    z_pg = lambda x: sub(x, params["wz1"], params["wz2"])
    e_pg = lambda x: sub(x, params["we1"], params["we2"])
    suff = lambda x: sub(x, params["ws1"], params["ws2"])
    lam = lambda x: mm(x, params["wl"].T) + params["bl"]

    z3, e3 = new_z[:, None, :], new_eps[:, None, :]
    theta_z, theta_e = z_pg(z3), e_pg(e3)

    lnz, lne = sig(log_norm(theta_z)), sig(log_norm(theta_e))
    dz = mm(mm(jnp.swapaxes(theta_z, -2, -1), lnz * (1 - lnz)), one_matrix)
    de = mm(mm(jnp.swapaxes(theta_e, -2, -1), lne * (1 - lne)), one_matrix)
    kl_err = lne - jnp.sum(de, -2, keepdims=True) - lnz + jnp.sum(dz, -2, keepdims=True)

    nabla_z = lambda l: log_norm(z_pg(mm(l * (1 - l), one_matrix)))
    nabla_e = lambda l: log_norm(e_pg(mm(l * (1 - l), one_matrix)))

    batch = latent_z.shape[0]
    nzkl = -nabla_z(lnz) + z_pg(log_norm(lnz * (1 - lnz)))
    nzkl = nzkl + jnp.sum(mm(jnp.swapaxes(theta_z, -2, -1),
                             log_norm(nabla_z(lnz) * (1 - lnz))), -2, keepdims=True)
    nzkl = nzkl - jnp.sum(mm(jnp.swapaxes(theta_z, -2, -1),
                             log_norm(nabla_z(lnz) * lnz)), -2, keepdims=True)
    nzkl = lam(nzkl)
    nekl = nabla_e(lne) - e_pg(log_norm(lne * (1 - lne)))
    nekl = nekl - jnp.sum(mm(jnp.swapaxes(theta_e, -2, -1),
                             log_norm(nabla_e(lne) * (1 - lne))), -2, keepdims=True)
    nekl = nekl + jnp.sum(mm(jnp.swapaxes(theta_e, -2, -1),
                             log_norm(nabla_e(lne) * lne)), -2, keepdims=True)
    nekl = lam(nekl)

    nz_post = z_pg(jnp.sum(suff(z3), 0, keepdims=True)) + suff(theta_z) * batch
    nz_post = nz_post - nabla_z(lnz)
    ne_post = 2 * jnp.sum(mm(jnp.swapaxes(theta_z, -2, -1), theta_e), -2, keepdims=True)

    nrm = lambda x: jnp.linalg.norm(x, axis=-1)
    ef = nrm(nzkl + nz_post) + nrm(nekl + ne_post) + nrm(kl_err)    # (B, 1)
    return new_z, new_eps, ef, kl_err


def init_params(key, dim):
    """Deterministic synthetic parameters matching the module's __init__ shapes."""
    ks = jax.random.split(key, 12)
    w = lambda k, shape: 0.1 * jax.random.normal(k, shape, jnp.float32)
    return {
        "w1": w(ks[0], (dim, dim)), "w2": w(ks[1], (dim, dim)),
        "wz1": w(ks[2], (dim, 5 * dim)), "wz2": w(ks[3], (5 * dim, dim)),
        "we1": w(ks[4], (dim, 5 * dim)), "we2": w(ks[5], (5 * dim, dim)),
        "ws1": w(ks[6], (dim, 5 * dim)), "ws2": w(ks[7], (5 * dim, dim)),
        "lw1": w(ks[8], (dim, 5 * dim)), "lw2": w(ks[9], (5 * dim, dim)),
        # nn.Linear lambda_: weight (out, in) torch layout, bias carried as (1, dim)
        "wl": w(ks[10], (dim, dim)), "bl": w(ks[11], (1, dim)),
        # nu / post_carrier are never used by any returned value -> omitted
    }


if __name__ == "__main__":
    B, D = 4, 16          # batch=4, latent_dim=16
    key = jax.random.PRNGKey(0)
    kz, ke, kp = jax.random.split(key, 3)
    z = jax.random.normal(kz, (B, D), jnp.float32)
    eps = jax.random.normal(ke, (B, D), jnp.float32)
    params = init_params(kp, D)

    new_z, new_eps, ef, kl = invert_equiv_forward(z, eps, params, training=True)
    jax.block_until_ready((new_z, new_eps, ef, kl))

    rz, re, ref_ef, ref_kl = torch_ref_forward(z, eps, params, training=True)

    assert new_z.shape == (B, D) and new_eps.shape == (B, D)
    assert ef.shape == (B, 1) and kl.shape == (B, 1, D)
    for a in (new_z, new_eps, ef, kl):
        assert bool(jnp.all(jnp.isfinite(a)))
    # kernel: DEFAULT MXU precision + bf16-stored (pre-composed) weights + EUP
    # approx-reciprocal sigmoids vs a HIGHEST-precision reference -> loose tol.
    tol = dict(atol=5e-2, rtol=5e-2)
    assert bool(jnp.allclose(new_z, rz, **tol))
    assert bool(jnp.allclose(new_eps, re, **tol))
    assert bool(jnp.allclose(ef, ref_ef, **tol))
    assert bool(jnp.allclose(kl, ref_kl, **tol))
    print("KERNEL_OK")
</pallas_src>

<mosaic_0001>
module attributes {stable_mosaic.version = 11 : i64} {
  func.func @ief_kernel(%arg0: i32, %arg1: memref<8x16xf32, #tpu.memory_space<vmem>>, %arg2: memref<8x16xf32, #tpu.memory_space<vmem>>, %arg3: memref<16x16xbf16, #tpu.memory_space<vmem>>, %arg4: memref<16x16xbf16, #tpu.memory_space<vmem>>, %arg5: memref<16x16xbf16, #tpu.memory_space<vmem>>, %arg6: memref<16x16xbf16, #tpu.memory_space<vmem>>, %arg7: memref<16x16xbf16, #tpu.memory_space<vmem>>, %arg8: memref<16x16xbf16, #tpu.memory_space<vmem>>, %arg9: memref<1x16xf32, #tpu.memory_space<vmem>>, %arg10: memref<1x16xf32, #tpu.memory_space<vmem>>, %arg11: memref<8x128xf32, #tpu.memory_space<vmem>>) attributes {dimension_semantics = [#tpu.dimension_semantics<parallel>], iteration_bounds = array<i64: 2>, scalar_prefetch = 0 : i64, scratch_operands = 0 : i64, tpu.core_type = #tpu.core_type<tc>, window_params = [{transform_indices = @transform_0, window_bounds = array<i64: 8, 16>}, {transform_indices = @transform_1, window_bounds = array<i64: 8, 16>}, {pipeline_mode = #tpu.pipeline_mode<synchronous>, transform_indices = @transform_2, window_bounds = array<i64: 16, 16>}, {pipeline_mode = #tpu.pipeline_mode<synchronous>, transform_indices = @transform_3, window_bounds = array<i64: 16, 16>}, {pipeline_mode = #tpu.pipeline_mode<synchronous>, transform_indices = @transform_4, window_bounds = array<i64: 16, 16>}, {pipeline_mode = #tpu.pipeline_mode<synchronous>, transform_indices = @transform_5, window_bounds = array<i64: 16, 16>}, {pipeline_mode = #tpu.pipeline_mode<synchronous>, transform_indices = @transform_6, window_bounds = array<i64: 16, 16>}, {pipeline_mode = #tpu.pipeline_mode<synchronous>, transform_indices = @transform_7, window_bounds = array<i64: 16, 16>}, {pipeline_mode = #tpu.pipeline_mode<synchronous>, transform_indices = @transform_8, window_bounds = array<i64: 1, 16>}, {pipeline_mode = #tpu.pipeline_mode<synchronous>, transform_indices = @transform_9, window_bounds = array<i64: 1, 16>}, {transform_indices = @transform_10, window_bounds = array<i64: 8, 128>}]} {
    %c0 = arith.constant 0 : index
    %c0_0 = arith.constant 0 : index
    %0 = vector.load %arg3[%c0, %c0_0] : memref<16x16xbf16, #tpu.memory_space<vmem>>, vector<16x16xbf16>
    %1 = arith.extf %0 : vector<16x16xbf16> to vector<16x16xf32>
    %c0_1 = arith.constant 0 : index
    %c0_2 = arith.constant 0 : index
    %2 = vector.load %arg4[%c0_1, %c0_2] : memref<16x16xbf16, #tpu.memory_space<vmem>>, vector<16x16xbf16>
    %3 = arith.extf %2 : vector<16x16xbf16> to vector<16x16xf32>
    %c0_3 = arith.constant 0 : index
    %c0_4 = arith.constant 0 : index
    %4 = vector.load %arg5[%c0_3, %c0_4] : memref<16x16xbf16, #tpu.memory_space<vmem>>, vector<16x16xbf16>
    %5 = arith.extf %4 : vector<16x16xbf16> to vector<16x16xf32>
    %c0_5 = arith.constant 0 : index
    %c0_6 = arith.constant 0 : index
    %6 = vector.load %arg6[%c0_5, %c0_6] : memref<16x16xbf16, #tpu.memory_space<vmem>>, vector<16x16xbf16>
    %7 = arith.extf %6 : vector<16x16xbf16> to vector<16x16xf32>
    %c0_7 = arith.constant 0 : index
    %c0_8 = arith.constant 0 : index
    %8 = vector.load %arg7[%c0_7, %c0_8] : memref<16x16xbf16, #tpu.memory_space<vmem>>, vector<16x16xbf16>
    %9 = arith.extf %8 : vector<16x16xbf16> to vector<16x16xf32>
    %c0_9 = arith.constant 0 : index
    %c0_10 = arith.constant 0 : index
    %10 = vector.load %arg8[%c0_9, %c0_10] : memref<16x16xbf16, #tpu.memory_space<vmem>>, vector<16x16xbf16>
    %11 = arith.extf %10 : vector<16x16xbf16> to vector<16x16xf32>
    %c0_11 = arith.constant 0 : index
    %c0_12 = arith.constant 0 : index
    %12 = vector.load %arg9[%c0_11, %c0_12] : memref<1x16xf32, #tpu.memory_space<vmem>>, vector<1x16xf32>
    %c0_13 = arith.constant 0 : index
    %c0_14 = arith.constant 0 : index
    %13 = vector.load %arg10[%c0_13, %c0_14] : memref<1x16xf32, #tpu.memory_space<vmem>>, vector<1x16xf32>
    %c0_15 = arith.constant 0 : index
    %c0_16 = arith.constant 0 : index
    %14 = vector.load %arg1[%c0_15, %c0_16] : memref<8x16xf32, #tpu.memory_space<vmem>>, vector<8x16xf32>
    %cst = arith.constant dense<0.000000e+00> : vector<8x16xf32>
    %15 = tpu.matmul %14, %1, %cst {dimension_numbers = #tpu.dot_dimension_numbers<[1], [0], [0], [1], [0, 0, 1, 1], [], []>} : vector<8x16xf32>, vector<16x16xf32>, vector<8x16xf32> -> vector<8x16xf32>
    %c0_17 = arith.constant 0 : index
    %c0_18 = arith.constant 0 : index
    %16 = vector.load %arg2[%c0_17, %c0_18] : memref<8x16xf32, #tpu.memory_space<vmem>>, vector<8x16xf32>
    %cst_19 = arith.constant dense<0.000000e+00> : vector<8x16xf32>
    %17 = tpu.matmul %16, %1, %cst_19 {dimension_numbers = #tpu.dot_dimension_numbers<[1], [0], [0], [1], [0, 0, 1, 1], [], []>} : vector<8x16xf32>, vector<16x16xf32>, vector<8x16xf32> -> vector<8x16xf32>
    %cst_20 = arith.constant dense<0.000000e+00> : vector<8x16xf32>
    %18 = tpu.matmul %15, %3, %cst_20 {dimension_numbers = #tpu.dot_dimension_numbers<[1], [0], [0], [1], [0, 0, 1, 1], [], []>} : vector<8x16xf32>, vector<16x16xf32>, vector<8x16xf32> -> vector<8x16xf32>
    %cst_21 = arith.constant dense<0.000000e+00> : vector<8x16xf32>
    %19 = tpu.matmul %17, %5, %cst_21 {dimension_numbers = #tpu.dot_dimension_numbers<[1], [0], [0], [1], [0, 0, 1, 1], [], []>} : vector<8x16xf32>, vector<16x16xf32>, vector<8x16xf32> -> vector<8x16xf32>
    %cst_22 = arith.constant dense<0.000000e+00> : vector<8xf32>
    %20 = vector.multi_reduction <add>, %18, %cst_22 [1] : vector<8x16xf32> to vector<8xf32>
    %21 = vector.shape_cast %20 : vector<8xf32> to vector<8x1xf32>
    %cst_23 = arith.constant dense<0.000000e+00> : vector<8xf32>
    %22 = vector.multi_reduction <add>, %19, %cst_23 [1] : vector<8x16xf32> to vector<8xf32>
    %23 = vector.shape_cast %22 : vector<8xf32> to vector<8x1xf32>
    %cst_24 = arith.constant dense<0.000000e+00> : vector<8x16xf32>
    %24 = tpu.matmul %18, %9, %cst_24 {dimension_numbers = #tpu.dot_dimension_numbers<[1], [0], [0], [1], [0, 0, 1, 1], [], []>} : vector<8x16xf32>, vector<16x16xf32>, vector<8x16xf32> -> vector<8x16xf32>
    %cst_25 = arith.constant 0.000000e+00 : f32
    %25 = vector.broadcast %cst_25 : f32 to vector<8x16xf32>
    %26 = arith.subf %25, %24 : vector<8x16xf32>
    %27 = math.exp %26 : vector<8x16xf32>
    %cst_26 = arith.constant 1.000000e+00 : f32
    %28 = vector.broadcast %cst_26 : f32 to vector<8x16xf32>
    %29 = arith.addf %28, %27 : vector<8x16xf32>
    %30 = tpu.reciprocal %29 {approx = true} : vector<8x16xf32> -> vector<8x16xf32>
    %cst_27 = arith.constant 0.000000e+00 : f32
    %31 = vector.broadcast %cst_27 : f32 to vector<8x16xf32>
    %32 = arith.subf %31, %30 : vector<8x16xf32>
    %33 = math.exp %32 : vector<8x16xf32>
    %cst_28 = arith.constant 1.000000e+00 : f32
    %34 = vector.broadcast %cst_28 : f32 to vector<8x16xf32>
    %35 = arith.addf %34, %33 : vector<8x16xf32>
    %36 = tpu.reciprocal %35 {approx = true} : vector<8x16xf32> -> vector<8x16xf32>
    %cst_29 = arith.constant dense<0.000000e+00> : vector<8x16xf32>
    %37 = tpu.matmul %19, %9, %cst_29 {dimension_numbers = #tpu.dot_dimension_numbers<[1], [0], [0], [1], [0, 0, 1, 1], [], []>} : vector<8x16xf32>, vector<16x16xf32>, vector<8x16xf32> -> vector<8x16xf32>
    %cst_30 = arith.constant 0.000000e+00 : f32
    %38 = vector.broadcast %cst_30 : f32 to vector<8x16xf32>
    %39 = arith.subf %38, %37 : vector<8x16xf32>
    %40 = math.exp %39 : vector<8x16xf32>
    %cst_31 = arith.constant 1.000000e+00 : f32
    %41 = vector.broadcast %cst_31 : f32 to vector<8x16xf32>
    %42 = arith.addf %41, %40 : vector<8x16xf32>
    %43 = tpu.reciprocal %42 {approx = true} : vector<8x16xf32> -> vector<8x16xf32>
    %cst_32 = arith.constant 0.000000e+00 : f32
    %44 = vector.broadcast %cst_32 : f32 to vector<8x16xf32>
    %45 = arith.subf %44, %43 : vector<8x16xf32>
    %46 = math.exp %45 : vector<8x16xf32>
    %cst_33 = arith.constant 1.000000e+00 : f32
    %47 = vector.broadcast %cst_33 : f32 to vector<8x16xf32>
    %48 = arith.addf %47, %46 : vector<8x16xf32>
    %49 = tpu.reciprocal %48 {approx = true} : vector<8x16xf32> -> vector<8x16xf32>
    %cst_34 = arith.constant 1.000000e+00 : f32
    %50 = vector.broadcast %cst_34 : f32 to vector<8x16xf32>
    %51 = arith.subf %50, %36 : vector<8x16xf32>
    %52 = arith.mulf %36, %51 : vector<8x16xf32>
    %cst_35 = arith.constant 1.000000e+00 : f32
    %53 = vector.broadcast %cst_35 : f32 to vector<8x16xf32>
    %54 = arith.subf %53, %49 : vector<8x16xf32>
    %55 = arith.mulf %49, %54 : vector<8x16xf32>
    %cst_36 = arith.constant dense<0.000000e+00> : vector<8x16xf32>
    %56 = tpu.matmul %52, %9, %cst_36 {dimension_numbers = #tpu.dot_dimension_numbers<[1], [0], [0], [1], [0, 0, 1, 1], [], []>} : vector<8x16xf32>, vector<16x16xf32>, vector<8x16xf32> -> vector<8x16xf32>
    %cst_37 = arith.constant dense<0.000000e+00> : vector<8x16xf32>
    %57 = tpu.matmul %55, %9, %cst_37 {dimension_numbers = #tpu.dot_dimension_numbers<[1], [0], [0], [1], [0, 0, 1, 1], [], []>} : vector<8x16xf32>, vector<16x16xf32>, vector<8x16xf32> -> vector<8x16xf32>
    %cst_38 = arith.constant 0.000000e+00 : f32
    %58 = vector.broadcast %cst_38 : f32 to vector<8x16xf32>
    %59 = arith.subf %58, %56 : vector<8x16xf32>
    %60 = math.exp %59 : vector<8x16xf32>
    %cst_39 = arith.constant 1.000000e+00 : f32
    %61 = vector.broadcast %cst_39 : f32 to vector<8x16xf32>
    %62 = arith.addf %61, %60 : vector<8x16xf32>
    %63 = tpu.reciprocal %62 {approx = true} : vector<8x16xf32> -> vector<8x16xf32>
    %cst_40 = arith.constant 0.000000e+00 : f32
    %64 = vector.broadcast %cst_40 : f32 to vector<8x16xf32>
    %65 = arith.subf %64, %57 : vector<8x16xf32>
    %66 = math.exp %65 : vector<8x16xf32>
    %cst_41 = arith.constant 1.000000e+00 : f32
    %67 = vector.broadcast %cst_41 : f32 to vector<8x16xf32>
    %68 = arith.addf %67, %66 : vector<8x16xf32>
    %69 = tpu.reciprocal %68 {approx = true} : vector<8x16xf32> -> vector<8x16xf32>
    %70 = vector.broadcast %23 : vector<8x1xf32> to vector<8x16xf32>
    %71 = arith.mulf %70, %57 : vector<8x16xf32>
    %72 = arith.subf %49, %71 : vector<8x16xf32>
    %73 = arith.subf %72, %36 : vector<8x16xf32>
    %74 = vector.broadcast %21 : vector<8x1xf32> to vector<8x16xf32>
    %75 = arith.mulf %74, %56 : vector<8x16xf32>
    %76 = arith.addf %73, %75 : vector<8x16xf32>
    %cst_42 = arith.constant dense<0.000000e+00> : vector<8x16xf32>
    %77 = tpu.matmul %56, %3, %cst_42 {dimension_numbers = #tpu.dot_dimension_numbers<[1], [0], [0], [1], [0, 0, 1, 1], [], []>} : vector<8x16xf32>, vector<16x16xf32>, vector<8x16xf32> -> vector<8x16xf32>
    %cst_43 = arith.constant dense<0.000000e+00> : vector<8x16xf32>
    %78 = tpu.matmul %77, %9, %cst_43 {dimension_numbers = #tpu.dot_dimension_numbers<[1], [0], [0], [1], [0, 0, 1, 1], [], []>} : vector<8x16xf32>, vector<16x16xf32>, vector<8x16xf32> -> vector<8x16xf32>
    %cst_44 = arith.constant 0.000000e+00 : f32
    %79 = vector.broadcast %cst_44 : f32 to vector<8x16xf32>
    %80 = arith.subf %79, %78 : vector<8x16xf32>
    %81 = math.exp %80 : vector<8x16xf32>
    %cst_45 = arith.constant 1.000000e+00 : f32
    %82 = vector.broadcast %cst_45 : f32 to vector<8x16xf32>
    %83 = arith.addf %82, %81 : vector<8x16xf32>
    %84 = tpu.reciprocal %83 {approx = true} : vector<8x16xf32> -> vector<8x16xf32>
    %cst_46 = arith.constant dense<0.000000e+00> : vector<8x16xf32>
    %85 = tpu.matmul %57, %5, %cst_46 {dimension_numbers = #tpu.dot_dimension_numbers<[1], [0], [0], [1], [0, 0, 1, 1], [], []>} : vector<8x16xf32>, vector<16x16xf32>, vector<8x16xf32> -> vector<8x16xf32>
    %cst_47 = arith.constant dense<0.000000e+00> : vector<8x16xf32>
    %86 = tpu.matmul %85, %9, %cst_47 {dimension_numbers = #tpu.dot_dimension_numbers<[1], [0], [0], [1], [0, 0, 1, 1], [], []>} : vector<8x16xf32>, vector<16x16xf32>, vector<8x16xf32> -> vector<8x16xf32>
    %cst_48 = arith.constant 0.000000e+00 : f32
    %87 = vector.broadcast %cst_48 : f32 to vector<8x16xf32>
    %88 = arith.subf %87, %86 : vector<8x16xf32>
    %89 = math.exp %88 : vector<8x16xf32>
    %cst_49 = arith.constant 1.000000e+00 : f32
    %90 = vector.broadcast %cst_49 : f32 to vector<8x16xf32>
    %91 = arith.addf %90, %89 : vector<8x16xf32>
    %92 = tpu.reciprocal %91 {approx = true} : vector<8x16xf32> -> vector<8x16xf32>
    %cst_50 = arith.constant dense<0.000000e+00> : vector<8x16xf32>
    %93 = tpu.matmul %63, %3, %cst_50 {dimension_numbers = #tpu.dot_dimension_numbers<[1], [0], [0], [1], [0, 0, 1, 1], [], []>} : vector<8x16xf32>, vector<16x16xf32>, vector<8x16xf32> -> vector<8x16xf32>
    %cst_51 = arith.constant dense<0.000000e+00> : vector<8x16xf32>
    %94 = tpu.matmul %69, %5, %cst_51 {dimension_numbers = #tpu.dot_dimension_numbers<[1], [0], [0], [1], [0, 0, 1, 1], [], []>} : vector<8x16xf32>, vector<16x16xf32>, vector<8x16xf32> -> vector<8x16xf32>
    %95 = arith.mulf %84, %36 : vector<8x16xf32>
    %96 = arith.mulf %92, %49 : vector<8x16xf32>
    %97 = arith.subf %84, %95 : vector<8x16xf32>
    %cst_52 = arith.constant dense<0.000000e+00> : vector<8x16xf32>
    %98 = tpu.matmul %97, %9, %cst_52 {dimension_numbers = #tpu.dot_dimension_numbers<[1], [0], [0], [1], [0, 0, 1, 1], [], []>} : vector<8x16xf32>, vector<16x16xf32>, vector<8x16xf32> -> vector<8x16xf32>
    %cst_53 = arith.constant 0.000000e+00 : f32
    %99 = vector.broadcast %cst_53 : f32 to vector<8x16xf32>
    %100 = arith.subf %99, %98 : vector<8x16xf32>
    %101 = math.exp %100 : vector<8x16xf32>
    %cst_54 = arith.constant 1.000000e+00 : f32
    %102 = vector.broadcast %cst_54 : f32 to vector<8x16xf32>
    %103 = arith.addf %102, %101 : vector<8x16xf32>
    %104 = tpu.reciprocal %103 {approx = true} : vector<8x16xf32> -> vector<8x16xf32>
    %cst_55 = arith.constant dense<0.000000e+00> : vector<8x16xf32>
    %105 = tpu.matmul %95, %9, %cst_55 {dimension_numbers = #tpu.dot_dimension_numbers<[1], [0], [0], [1], [0, 0, 1, 1], [], []>} : vector<8x16xf32>, vector<16x16xf32>, vector<8x16xf32> -> vector<8x16xf32>
    %cst_56 = arith.constant 0.000000e+00 : f32
    %106 = vector.broadcast %cst_56 : f32 to vector<8x16xf32>
    %107 = arith.subf %106, %105 : vector<8x16xf32>
    %108 = math.exp %107 : vector<8x16xf32>
    %cst_57 = arith.constant 1.000000e+00 : f32
    %109 = vector.broadcast %cst_57 : f32 to vector<8x16xf32>
    %110 = arith.addf %109, %108 : vector<8x16xf32>
    %111 = tpu.reciprocal %110 {approx = true} : vector<8x16xf32> -> vector<8x16xf32>
    %112 = arith.subf %92, %96 : vector<8x16xf32>
    %cst_58 = arith.constant dense<0.000000e+00> : vector<8x16xf32>
    %113 = tpu.matmul %112, %9, %cst_58 {dimension_numbers = #tpu.dot_dimension_numbers<[1], [0], [0], [1], [0, 0, 1, 1], [], []>} : vector<8x16xf32>, vector<16x16xf32>, vector<8x16xf32> -> vector<8x16xf32>
    %cst_59 = arith.constant 0.000000e+00 : f32
    %114 = vector.broadcast %cst_59 : f32 to vector<8x16xf32>
    %115 = arith.subf %114, %113 : vector<8x16xf32>
    %116 = math.exp %115 : vector<8x16xf32>
    %cst_60 = arith.constant 1.000000e+00 : f32
    %117 = vector.broadcast %cst_60 : f32 to vector<8x16xf32>
    %118 = arith.addf %117, %116 : vector<8x16xf32>
    %119 = tpu.reciprocal %118 {approx = true} : vector<8x16xf32> -> vector<8x16xf32>
    %cst_61 = arith.constant dense<0.000000e+00> : vector<8x16xf32>
    %120 = tpu.matmul %96, %9, %cst_61 {dimension_numbers = #tpu.dot_dimension_numbers<[1], [0], [0], [1], [0, 0, 1, 1], [], []>} : vector<8x16xf32>, vector<16x16xf32>, vector<8x16xf32> -> vector<8x16xf32>
    %cst_62 = arith.constant 0.000000e+00 : f32
    %121 = vector.broadcast %cst_62 : f32 to vector<8x16xf32>
    %122 = arith.subf %121, %120 : vector<8x16xf32>
    %123 = math.exp %122 : vector<8x16xf32>
    %cst_63 = arith.constant 1.000000e+00 : f32
    %124 = vector.broadcast %cst_63 : f32 to vector<8x16xf32>
    %125 = arith.addf %124, %123 : vector<8x16xf32>
    %126 = tpu.reciprocal %125 {approx = true} : vector<8x16xf32> -> vector<8x16xf32>
    %cst_64 = arith.constant 0.000000e+00 : f32
    %127 = vector.broadcast %cst_64 : f32 to vector<8x16xf32>
    %128 = arith.subf %127, %84 : vector<8x16xf32>
    %129 = arith.addf %128, %93 : vector<8x16xf32>
    %130 = arith.subf %104, %111 : vector<8x16xf32>
    %131 = vector.broadcast %21 : vector<8x1xf32> to vector<8x16xf32>
    %132 = arith.mulf %131, %130 : vector<8x16xf32>
    %133 = arith.addf %129, %132 : vector<8x16xf32>
    %134 = arith.subf %92, %94 : vector<8x16xf32>
    %135 = arith.subf %119, %126 : vector<8x16xf32>
    %136 = vector.broadcast %23 : vector<8x1xf32> to vector<8x16xf32>
    %137 = arith.mulf %136, %135 : vector<8x16xf32>
    %138 = arith.subf %134, %137 : vector<8x16xf32>
    %cst_65 = arith.constant dense<0.000000e+00> : vector<8x16xf32>
    %139 = tpu.matmul %133, %11, %cst_65 {dimension_numbers = #tpu.dot_dimension_numbers<[1], [0], [0], [1], [0, 0, 1, 1], [], []>} : vector<8x16xf32>, vector<16x16xf32>, vector<8x16xf32> -> vector<8x16xf32>
    %140 = vector.broadcast %12 : vector<1x16xf32> to vector<8x16xf32>
    %141 = arith.addf %139, %140 : vector<8x16xf32>
    %cst_66 = arith.constant dense<0.000000e+00> : vector<8x16xf32>
    %142 = tpu.matmul %138, %11, %cst_66 {dimension_numbers = #tpu.dot_dimension_numbers<[1], [0], [0], [1], [0, 0, 1, 1], [], []>} : vector<8x16xf32>, vector<16x16xf32>, vector<8x16xf32> -> vector<8x16xf32>
    %143 = vector.broadcast %12 : vector<1x16xf32> to vector<8x16xf32>
    %144 = arith.addf %142, %143 : vector<8x16xf32>
    %cst_67 = arith.constant dense<0.000000e+00> : vector<8x16xf32>
    %145 = tpu.matmul %18, %7, %cst_67 {dimension_numbers = #tpu.dot_dimension_numbers<[1], [0], [0], [1], [0, 0, 1, 1], [], []>} : vector<8x16xf32>, vector<16x16xf32>, vector<8x16xf32> -> vector<8x16xf32>
    %146 = vector.broadcast %13 : vector<1x16xf32> to vector<8x16xf32>
    %147 = arith.addf %146, %145 : vector<8x16xf32>
    %148 = arith.subf %147, %84 : vector<8x16xf32>
    %cst_68 = arith.constant 2.000000e+00 : f32
    %149 = vector.broadcast %cst_68 : f32 to vector<8x1xf32>
    %150 = arith.mulf %149, %21 : vector<8x1xf32>
    %151 = vector.broadcast %150 : vector<8x1xf32> to vector<8x16xf32>
    %152 = arith.mulf %151, %19 : vector<8x16xf32>
    %153 = arith.addf %141, %148 : vector<8x16xf32>
    %154 = arith.mulf %153, %153 : vector<8x16xf32>
    %cst_69 = arith.constant dense<0.000000e+00> : vector<8xf32>
    %155 = vector.multi_reduction <add>, %154, %cst_69 [1] : vector<8x16xf32> to vector<8xf32>
    %156 = vector.shape_cast %155 : vector<8xf32> to vector<8x1xf32>
    %157 = math.sqrt %156 : vector<8x1xf32>
    %158 = arith.addf %144, %152 : vector<8x16xf32>
    %159 = arith.mulf %158, %158 : vector<8x16xf32>
    %cst_70 = arith.constant dense<0.000000e+00> : vector<8xf32>
    %160 = vector.multi_reduction <add>, %159, %cst_70 [1] : vector<8x16xf32> to vector<8xf32>
    %161 = vector.shape_cast %160 : vector<8xf32> to vector<8x1xf32>
    %162 = math.sqrt %161 : vector<8x1xf32>
    %163 = arith.addf %157, %162 : vector<8x1xf32>
    %164 = arith.mulf %76, %76 : vector<8x16xf32>
    %cst_71 = arith.constant dense<0.000000e+00> : vector<8xf32>
    %165 = vector.multi_reduction <add>, %164, %cst_71 [1] : vector<8x16xf32> to vector<8xf32>
    %166 = vector.shape_cast %165 : vector<8xf32> to vector<8x1xf32>
    %167 = math.sqrt %166 : vector<8x1xf32>
    %168 = arith.addf %163, %167 : vector<8x1xf32>
    %169 = vector.shape_cast %168 : vector<8x1xf32> to vector<8x1xf32>
    %170 = vector.broadcast %169 : vector<8x1xf32> to vector<8x80xf32>
    %171 = tpu.concatenate %15, %17, %76, %170 in 1 : vector<8x16xf32>, vector<8x16xf32>, vector<8x16xf32>, vector<8x80xf32> -> vector<8x128xf32>
    %c0_72 = arith.constant 0 : index
    %c0_73 = arith.constant 0 : index
    %172 = vector.load %arg11[%c0_72, %c0_73] : memref<8x128xf32, #tpu.memory_space<vmem>>, vector<8x128xf32>
    tpu.vector_store %arg11[%c0_72, %c0_73], %171 {strides = array<i32>} : memref<8x128xf32, #tpu.memory_space<vmem>>, vector<8x128xf32>,
    return
  }
  func.func @transform_0(%arg0: i32) -> (i32, i32) {
    %c0_i32 = arith.constant 0 : i32
    %c0_i32_0 = arith.constant 0 : i32
    return %arg0, %c0_i32 : i32, i32
  }
  func.func @transform_1(%arg0: i32) -> (i32, i32) {
    %c0_i32 = arith.constant 0 : i32
    %c0_i32_0 = arith.constant 0 : i32
    return %arg0, %c0_i32 : i32, i32
  }
  func.func @transform_2(%arg0: i32) -> (i32, i32) {
    %c0_i32 = arith.constant 0 : i32
    %c0_i32_0 = arith.constant 0 : i32
    %c0_i32_1 = arith.constant 0 : i32
    return %c0_i32, %c0_i32_0 : i32, i32
  }
  func.func @transform_3(%arg0: i32) -> (i32, i32) {
    %c0_i32 = arith.constant 0 : i32
    %c0_i32_0 = arith.constant 0 : i32
    %c0_i32_1 = arith.constant 0 : i32
    return %c0_i32, %c0_i32_0 : i32, i32
  }
  func.func @transform_4(%arg0: i32) -> (i32, i32) {
    %c0_i32 = arith.constant 0 : i32
    %c0_i32_0 = arith.constant 0 : i32
    %c0_i32_1 = arith.constant 0 : i32
    return %c0_i32, %c0_i32_0 : i32, i32
  }
  func.func @transform_5(%arg0: i32) -> (i32, i32) {
    %c0_i32 = arith.constant 0 : i32
    %c0_i32_0 = arith.constant 0 : i32
    %c0_i32_1 = arith.constant 0 : i32
    return %c0_i32, %c0_i32_0 : i32, i32
  }
  func.func @transform_6(%arg0: i32) -> (i32, i32) {
    %c0_i32 = arith.constant 0 : i32
    %c0_i32_0 = arith.constant 0 : i32
    %c0_i32_1 = arith.constant 0 : i32
    return %c0_i32, %c0_i32_0 : i32, i32
  }
  func.func @transform_7(%arg0: i32) -> (i32, i32) {
    %c0_i32 = arith.constant 0 : i32
    %c0_i32_0 = arith.constant 0 : i32
    %c0_i32_1 = arith.constant 0 : i32
    return %c0_i32, %c0_i32_0 : i32, i32
  }
  func.func @transform_8(%arg0: i32) -> (i32, i32) {
    %c0_i32 = arith.constant 0 : i32
    %c0_i32_0 = arith.constant 0 : i32
    %c0_i32_1 = arith.constant 0 : i32
    return %c0_i32, %c0_i32_0 : i32, i32
  }
  func.func @transform_9(%arg0: i32) -> (i32, i32) {
    %c0_i32 = arith.constant 0 : i32
    %c0_i32_0 = arith.constant 0 : i32
    %c0_i32_1 = arith.constant 0 : i32
    return %c0_i32, %c0_i32_0 : i32, i32
  }
  func.func @transform_10(%arg0: i32) -> (i32, i32) {
    %c0_i32 = arith.constant 0 : i32
    %c0_i32_0 = arith.constant 0 : i32
    return %arg0, %c0_i32 : i32, i32
  }
}

</mosaic_0001>

<bundles_post_ra>
// kernel: tpu_custom_call.1
= control target key start
LH: loop header
LB: loop body
LE: loop exit
PB: predicated region body
PF: predicated region fallthrough
CT: control target
= control target key end

     0   :  { %s3567_s0 = inlined_call_operand.hbm [shape: f32[16,16], index: 0, kind: input, shape index: {}]   ;;  %s3568_s1 = inlined_call_operand.hbm [shape: f32[16,16], index: 1, kind: input, shape index: {}]   ;;  %s3569_s2 = inlined_call_operand.hbm [shape: bf16[16,16], index: 2, kind: input, shape index: {}]   ;;  %s3570_s3 = inlined_call_operand.vmem [shape: bf16[16,16], index: 3, kind: input, shape index: {}]   ;;  %s3571_s4 = inlined_call_operand.hbm [shape: bf16[16,16], index: 4, kind: input, shape index: {}]   ;;  %s3572_s5 = inlined_call_operand.vmem [shape: bf16[16,16], index: 5, kind: input, shape index: {}]   ;;  %s3573_s6 = inlined_call_operand.hbm [shape: bf16[16,16], index: 6, kind: input, shape index: {}]   ;;  %s3574_s7 = inlined_call_operand.vmem [shape: bf16[16,16], index: 7, kind: input, shape index: {}]   ;;  %s3575_s8 = inlined_call_operand.vmem [shape: f32[1,16], index: 8, kind: input, shape index: {}]   ;;  %s3576_s9 = inlined_call_operand.vmem [shape: f32[1,16], index: 9, kind: input, shape index: {}]   ;;  %s3577_s10 = inlined_call_operand.hbm [shape: f32[16,128], index: 10, kind: output, shape index: {}]  }
   0x1   :  { %3585 = sst [smem:[#allocation19_spill]] %s3569_s2 }
   0x2   :  { %3586 = sst [smem:[#allocation20_spill]] %s3571_s4 }
   0x3   :  { %3587 = sst [smem:[#allocation21_spill]] %s3573_s6 }
   0x4   :  { %3588 = sst [smem:[#allocation22_spill]] %s3575_s8 }
   0x5   :  { %3589 = sst [smem:[#allocation23_spill]] %s3577_s10 }
   0x6   :  { %15 = vsyncpa [#allocation3], 0 }
   0x7   :  { %17 = vsyncpa [#allocation3 + $0x1], 0 }
   0x8   :  { %18 = vsyncpa [#allocation6], 0 }
   0x9   :  { %20 = vsyncpa [#allocation6 + $0x1], 0 }
   0xa   :  { %21 = vsyncpa [#allocation9], 0 }
   0xb   :  { %22 = vsyncpa [#allocation4], 0 }
   0xc   :  { %24 = vsyncpa [#allocation4 + $0x1], 0  ;;  %s3079_s13 = smov 0   ;;  %s3081_s14 = smov 0  }
   0xd   :  { %s3083_s15 = smov 0   ;;  %s3085_s16 = smov 0  }
   0xe LB: > { %3590 = sst [smem:[#allocation17_spill]] %s2997_s13  ;;  %s3100_s17 = sadd.s32 4294967295, %s3009_s16   ;;  %s3009_s16 = sphi %s3085_s16, %s3620_s16   ;;  %s3005_s15 = sphi %s3083_s15, %s3619_s15   ;;  %s3001_s14 = sphi %s3081_s14, %s3618_s14   ;;  %s2997_s13 = sphi %s3079_s13, %s3617_s13  }
   0xf   : > { %s2303_s18 = sadd.s32 4294967294, %s3009_s16   ;;  %p50_p0 = scmp.ne.s32.totalorder %s3001_s14, %s2997_s13 }
  0x10   : > { %p3578_p1 = scmp.eq.s32.totalorder %s3100_s17, 0  ;;  %p274_p3 = scmp.eq.s32.totalorder %s2303_s18, 1 }
  0x11   : > { %p2304_p5 = scmp.ge.s32.totalorder %s3009_s16, 1  ;;  %p281_p7 = scmp.lt.s32.totalorder %s3009_s16, 3 }
  0x12   : > { %p3109_p4 = por %p3578_p1, %p50_p0  ;;  %p3114_p6 = por %p274_p3, %p50_p0 }
  0x13   : > { %p3119_p8 = pnand %p2304_p5, %p281_p7  ;;  %s3011_s22 = smov [#allocation7]  }
  0x14   : > { %s3591_s19 = scalar_select %p3109_p4, 1, 0 }
  0x15   : > { %s3592_s20 = scalar_select %p3114_p6, 1, 0 }
  0x16   : > { %s3594_s21 = scalar_select %p3119_p8, 1, 0 }
  0x17   : > { %3593 = sst [smem:[#allocation18_spill]] %s3592_s20  ;;  %s293_s23 = sshll.u32 %s3011_s22, 4  ;;  %s3123_s23 = int_to_ptr.vmem [resolvable:$true] %s293_s23 }
  0x18   : > { %p2662_p9 = pneg %p3119_p8  ;;  %s3012_s25 = smov [#allocation8]  }
  0x19   : > { %s309_s26 = sshll.u32 %s3012_s25, 4  ;;  %s3013_s27 = smov [#allocation10]   ;;  %s3134_s26 = int_to_ptr.vmem [resolvable:$true] %s309_s26 }
  0x1a   : > { %p3130_p11 = pnand %p2662_p9, %p3578_p1  ;;  %s3136_s28 = sshll.u32 %s3013_s27, 4  ;;  %s326_s28 = int_to_ptr.vmem [resolvable:$true] %s3136_s28 }
  0x1b   : > { %s3596_s2 = sld [smem:[#allocation19_spill]] }
  0x1c   : > { %p3146_p13 = pneg %p3130_p11 }
  0x21   : > { %s2787_s11 = scalar_lea.hbm %s3596_s2, 128 }
  0x22   : > { %p2788_p12 = scmp.ne.s32.totalorder %s3596_s2, %s2787_s11  ;;  %p2794_p5 = scmp.lt.u32.totalorder %s2787_s11, %s3596_s2 }
  0x24   : > { %p2790_p0 = pnand %p3146_p13, %p2788_p12 }
  0x26   : > { %p2791_p3 = pneg %p2790_p0 }
  0x28   : > { %p2796_p7 = pnand %p2794_p5, %p2791_p3 }
  0x2a   : > { %2799 = shalt.err (!%p2796_p7)
}
  0x2b   : > { %s2800_s29 = scalar_lea.vmem %s3123_s23, 128  ;;  %p2808_p2 = scmp.lt.s32.totalorder %s3123_s23, %s3123_s23 }
  0x2c   : > { %p2801_p9 = scmp.ne.s32.totalorder %s3123_s23, %s2800_s29  ;;  %p2809_p6 = scmp.lt.s32.totalorder %s2800_s29, %s2800_s29 }
  0x2e   : > { %p2803_p10 = pnand %p2801_p9, %p3146_p13  ;;  %p2810_p12 = por %p2809_p6, %p2808_p2 }
  0x30   : > { %p2804_p1 = pneg %p2803_p10 }
  0x32   : > { %p2811_p0 = pnand %p2810_p12, %p2804_p1 }
  0x34   : > { %2814 = shalt.err (!%p2811_p0)
}
  0x35   : > { %s3014_s30 = smov 64   ;;  %s3015_s11 = smov 4  }
  0x36   : > { %2665 = dma.hbm_to_vmem [thread:$0]  (!%p3130_p11), %s3596_s2, 128, %s3123_s23, [#allocation6], %s3014_s30, %s3014_s30, %s3015_s11  }
  0x37   : > { %s3598_s4 = sld [smem:[#allocation20_spill]] }
  0x3d   : > { %s2815_s29 = scalar_lea.hbm %s3598_s4, 128 }
  0x3e   : > { %p2816_p1 = scmp.ne.s32.totalorder %s3598_s4, %s2815_s29  ;;  %p2822_p10 = scmp.lt.u32.totalorder %s2815_s29, %s3598_s4 }
  0x40   : > { %p2818_p2 = pnand %p2816_p1, %p3146_p13 }
  0x42   : > { %p2819_p6 = pneg %p2818_p2 }
  0x44   : > { %p2824_p3 = pnand %p2822_p10, %p2819_p6 }
  0x46   : > { %2827 = shalt.err (!%p2824_p3)
}
  0x47   : > { %s2828_s23 = scalar_lea.vmem %s3134_s26, 128  ;;  %p2836_p12 = scmp.lt.s32.totalorder %s3134_s26, %s3134_s26 }
  0x48   : > { %p2829_p5 = scmp.ne.s32.totalorder %s3134_s26, %s2828_s23  ;;  %p2837_p0 = scmp.lt.s32.totalorder %s2828_s23, %s2828_s23 }
  0x4a   : > { %p2831_p7 = pnand %p2829_p5, %p3146_p13  ;;  %p2838_p1 = por %p2837_p0, %p2836_p12 }
  0x4c   : > { %p2832_p9 = pneg %p2831_p7 }
  0x4e   : > { %p2839_p2 = pnand %p2838_p1, %p2832_p9 }
  0x50   : > { %2842 = shalt.err (!%p2839_p2)
}
  0x51   : > { %2668 = dma.hbm_to_vmem [thread:$0]  (!%p3130_p11), %s3598_s4, 128, %s3134_s26, [#allocation9], %s3014_s30, %s3014_s30, %s3015_s11  }
  0x52   : > { %s3599_s6 = sld [smem:[#allocation21_spill]] }
  0x58   : > { %s2843_s12 = scalar_lea.hbm %s3599_s6, 128 }
  0x59   : > { %p2844_p6 = scmp.ne.s32.totalorder %s3599_s6, %s2843_s12  ;;  %p2850_p5 = scmp.lt.u32.totalorder %s2843_s12, %s3599_s6 }
  0x5b   : > { %p2846_p10 = pnand %p2844_p6, %p3146_p13 }
  0x5d   : > { %p2847_p3 = pneg %p2846_p10 }
  0x5f   : > { %p2852_p7 = pnand %p2850_p5, %p2847_p3 }
  0x61   : > { %2855 = shalt.err (!%p2852_p7)
}
  0x62   : > { %s2856_s23 = scalar_lea.vmem %s326_s28, 128  ;;  %p2864_p1 = scmp.lt.s32.totalorder %s326_s28, %s326_s28 }
  0x63   : > { %p2857_p9 = scmp.ne.s32.totalorder %s326_s28, %s2856_s23  ;;  %p2865_p2 = scmp.lt.s32.totalorder %s2856_s23, %s2856_s23 }
  0x65   : > { %p2859_p12 = pnand %p2857_p9, %p3146_p13  ;;  %p2866_p4 = por %p2865_p2, %p2864_p1 }
  0x67   : > { %p2860_p0 = pneg %p2859_p12 }
  0x69   : > { %p2867_p8 = pnand %p2866_p4, %p2860_p0 }
  0x6b   : > { %2870 = shalt.err (!%p2867_p8)
}
  0x6c   : > { %2671 = dma.hbm_to_vmem [thread:$0]  (!%p3130_p11), %s3599_s6, 128, %s326_s28, [#allocation9], %s3014_s30, %s3014_s30, %s3015_s11  }
  0x6d   : > { %s3219_s22 = sadd.s32 1, %s3009_s16   ;;  %s37_s10 = sadd.s32 1, %s3005_s15 }
  0x6e   : > { %s34_s24 = ssub.s32 %s3009_s16, %s3219_s22  ;;  %p44_p8 = scmp.ne.s32.totalorder %s3005_s15, %s3001_s14 }
  0x6f   : > { %p35_p4 = scmp.eq.s32.totalorder %s34_s24, 0  ;;  %p45_p13 = scmp.eq.s32.totalorder %s3009_s16, 0 }
  0x70   : > { %p2686_p6 = scmp.lt.s32.totalorder %s3009_s16, 2  ;;  %p3600_p3 = scmp.eq.s32.totalorder %s3100_s17, 1 }
  0x71   : > { %s3229_s13 = scalar_select %p35_p4, %s3005_s15, %s37_s10  }
  0x72   : > { %p46_p10 = por %p45_p13, %p44_p8  ;;  %p3233_p5 = por %p3600_p3, %p44_p8 }
  0x73   : > { %s348_s12 = sand.u32 1, %s3005_s15   ;;  %s2310_s18 = sshll.u32 %s3009_s16, 7 }
  0x74   : > { %s3601_s20 = scalar_select %p3233_p5, 1, 0 }
  0x75   : > { %s3239_s28 = sshll.u32 %s348_s12, 3  ;;  %s3244_s25 = scalar_lea.hbm %s3567_s0, %s2310_s18 }
  0x76   : > { %s352_s27 = scalar_lea.vmem [#allocation2], %s3239_s28  ;;  %p3247_p11 = pnand %p2686_p6, %p46_p10 }
  0x77   : > { %s359_s29 = sshll.u32 %s352_s27, 4  ;;  %s3256_s24 = scalar_lea.hbm %s3568_s1, %s2310_s18  ;;  %s3251_s29 = int_to_ptr.vmem [resolvable:$true] %s359_s29 }
  0x78   : > { %s349_s10 = scalar_lea.sflag [#allocation3], %s348_s12  ;;  %s2871_s30 = scalar_lea.hbm %s3244_s25, 128 }
  0x79   : > { %p2872_p7 = scmp.ne.s32.totalorder %s3244_s25, %s2871_s30  ;;  %p2873_p9 = pneg %p3247_p11 }
  0x7a   : > { %s2876_s2 = scalar_lea.hbm %s3567_s0, 256  ;;  %p2877_p1 = scmp.lt.u32.totalorder %s3244_s25, %s3567_s0 }
  0x7b   : > { %p2874_p12 = pnand %p2873_p9, %p2872_p7  ;;  %p2878_p2 = scmp.lt.u32.totalorder %s2876_s2, %s2871_s30 }
  0x7c   : > { %p2880_p8 = scmp.lt.u32.totalorder %s2871_s30, %s3244_s25 }
  0x7d   : > { %p2875_p0 = pneg %p2874_p12  ;;  %p2879_p4 = por %p2878_p2, %p2877_p1 }
  0x7f   : > { %p2881_p13 = por %p2880_p8, %p2879_p4 }
  0x81   : > { %p2882_p6 = pnand %p2881_p13, %p2875_p0 }
  0x83   : > { %2885 = shalt.err (!%p2882_p6)
}
  0x84   : > { %s2886_s12 = scalar_lea.vmem %s3251_s29, 128  ;;  %s3016_s18 = smov [#allocation2]  }
  0x85   : > { %p2887_p10 = scmp.ne.s32.totalorder %s3251_s29, %s2886_s12  ;;  %s2891_s26 = sshll.u32 %s3016_s18, 4  ;;  %s2892_s26 = int_to_ptr.vmem [resolvable:$false] %s2891_s26 }
  0x86   : > { %s2893_s4 = scalar_lea.vmem %s2892_s26, 256  ;;  %p2894_p12 = scmp.lt.s32.totalorder %s3251_s29, %s2892_s26 }
  0x87   : > { %p2889_p3 = pnand %p2887_p10, %p2873_p9  ;;  %p2895_p1 = scmp.lt.s32.totalorder %s2893_s4, %s2886_s12 }
  0x89   : > { %p2890_p7 = pneg %p2889_p3  ;;  %p2896_p2 = por %p2895_p1, %p2894_p12 }
  0x8b   : > { %p2897_p4 = pnand %p2896_p2, %p2890_p7 }
  0x8d   : > { %2900 = shalt.err (!%p2897_p4)
}
  0x8e   : > { %2675 = dma.hbm_to_vmem [thread:$0]  (!%p3247_p11), %s3244_s25, 128, %s3251_s29, %s349_s10  }
  0x8f   : > { %s366_s2 = sand.u32 1, %s3009_s16   ;;  %s370_s6 = scalar_lea.vmem [#allocation5], %s3239_s28 }
  0x90   : > { %s377_s8 = sshll.u32 %s370_s6, 4  ;;  %s367_s30 = scalar_lea.sflag [#allocation6], %s366_s2  ;;  %s378_s8 = int_to_ptr.vmem [resolvable:$true] %s377_s8 }
  0x91   : > { %s2901_s11 = scalar_lea.hbm %s3256_s24, 128  ;;  %s2906_s18 = scalar_lea.hbm %s3568_s1, 256 }
  0x92   : > { %p2902_p0 = scmp.ne.s32.totalorder %s3256_s24, %s2901_s11  ;;  %p2907_p6 = scmp.lt.u32.totalorder %s3256_s24, %s3568_s1 }
  0x93   : > { %p2908_p10 = scmp.lt.u32.totalorder %s2906_s18, %s2901_s11  ;;  %p2910_p7 = scmp.lt.u32.totalorder %s2901_s11, %s3256_s24 }
  0x94   : > { %p2904_p8 = pnand %p2902_p0, %p2873_p9 }
  0x95   : > { %p2909_p3 = por %p2908_p10, %p2907_p6 }
  0x96   : > { %p2905_p13 = pneg %p2904_p8 }
  0x97   : > { %p2911_p12 = por %p2910_p7, %p2909_p3 }
  0x99   : > { %p2912_p1 = pnand %p2911_p12, %p2905_p13 }
  0x9b   : > { %2915 = shalt.err (!%p2912_p1)
}
  0x9c   : > { %s2916_s28 = scalar_lea.vmem %s378_s8, 128  ;;  %s3017_s25 = smov [#allocation5]  }
  0x9d   : > { %p2917_p2 = scmp.ne.s32.totalorder %s378_s8, %s2916_s28  ;;  %s2921_s29 = sshll.u32 %s3017_s25, 4  ;;  %s2922_s29 = int_to_ptr.vmem [resolvable:$false] %s2921_s29 }
  0x9e   : > { %s2923_s10 = scalar_lea.vmem %s2922_s29, 256  ;;  %p2924_p8 = scmp.lt.s32.totalorder %s378_s8, %s2922_s29 }
  0x9f   : > { %p2919_p4 = pnand %p2917_p2, %p2873_p9  ;;  %p2925_p5 = scmp.lt.s32.totalorder %s2923_s10, %s2916_s28 }
  0xa1   : > { %p2920_p0 = pneg %p2919_p4  ;;  %p2926_p6 = por %p2925_p5, %p2924_p8 }
  0xa3   : > { %p2927_p10 = pnand %p2926_p6, %p2920_p0 }
  0xa5   : > { %2930 = shalt.err (!%p2927_p10)
}
  0xa6   : > { %2678 = dma.hbm_to_vmem [thread:$0]  (!%p3247_p11), %s3256_s24, 128, %s378_s8, %s367_s30  }
  0xa7   : > { %p3603_p13 = scmp.ne.s32.totalorder %s3594_s21, 0 }
  0xa8   : > { %s3307_s2 = sand.u32 (!%p3603_p13), 1, %s3001_s14   ;;  %p3604_p5 = scmp.ne.s32.totalorder (!%p3603_p13), %s3591_s19, 0 }
  0xa9   : > { %386 = sbr.rel (%p3603_p13) target bundleno = 2206 (0x89e), region = 60  ;;  %s3310_s6 = sshll.u32 (!%p3603_p13), %s3307_s2, 3 }
  0xaa   : > { %s389_s11 = scalar_lea.sflag (!%p3603_p13), [#allocation3], %s3307_s2  ;;  %s392_s27 = scalar_lea.vmem (!%p3603_p13), [#allocation2], %s3310_s6 }
  0xb0   : > { %2976 = dma.done.wait (%p3604_p5), %s389_s11, 128  }
  0xb1   : > { %2978 = vsyncadd (%p3604_p5), %s389_s11, 4294967168  ;;  %s397_s21 = sand.u32 1, %s3100_s17   ;;  %s401_s24 = scalar_lea.vmem [#allocation5], %s3310_s6 }
  0xb2   : > { %s398_s23 = scalar_lea.sflag [#allocation6], %s397_s21 }
  0xb3   : > { %2980 = dma.done.wait (%p3604_p5), %s398_s23, 128  }
  0xb4   : > { %2982 = vsyncadd (%p3604_p5), %s398_s23, 4294967168  ;;  %p3605_p11 = scmp.eq.s32.totalorder %s3100_s17, 0 }
  0xb6   : > { %2984 = dma.done.wait (%p3605_p11), [#allocation6], 128   ;;  %p3606_p9 = pmov %p3605_p11 }
  0xb8   : > { %2986 = vsyncadd (%p3606_p9), [#allocation6], 4294967168  ;;  %p3607_p3 = pmov %p3606_p9 }
  0xba   : > { %2988 = dma.done.wait (%p3607_p3), [#allocation9], 256   ;;  %p3608_p7 = pmov %p3607_p3 }
  0xbb   : > { %v3018_v0 = vmov 0.0|0.0   ;;  %vm3019_vm0 = vmmov 0   ;;  %v3020_v1 = vmov 0.0   ;;  %v2348_v2 = vld [vmem:[#allocation7] sm:$0xff]   ;;  %vm482_vm1 = vcmask 130048   ;;  %v556_v4 = vld [vmem:[%s401_s24] sm:$0xff] }
  0xbc   : > { %2990 = vsyncadd (%p3608_p7), [#allocation9], 4294967040  ;;  %2581 = vmatprep.subr.bf16.mxu0 %v3018_v0  ;;  %2584 = vmatprep.subr.bf16.mxu1 %v3018_v0  ;;  %v481_v3 = vld [vmem:[%s392_s27] sm:$0xff]  ;;  %v3357_v7 = vld [vmem:[#allocation10] sm:$0xff]   ;;  %s3021_s30 = smov 32   ;;  %s3609_s11 = sld [smem:[#allocation22_spill]] }
  0xbd   : > { %2438 = vmatprep.mubr.msk.f32.mxu0 %vm3019_vm0, %v3020_v1  ;;  %2445 = vmatprep.mubr.msk.f32.mxu1 %vm3019_vm0, %v3020_v1  ;;  %v3342_v5 = vld [vmem:[%s3570_s3] sm:$0xff]   ;;  %v3345_v6 = vld [vmem:[#allocation8] sm:$0xff]   ;;  %s3022_s27 = smov 16   ;;  %vm2163_vm8 = vcmask 261120   ;;  %s2344_s21 = sshll.u32 %s3100_s17, 7  ;;  %vm2165_vm9 = vcmask 392192  }
  0xbe   : > { %2583 = vmatpush3.bf16.msra.mxu0 %v2348_v2  ;;  %2586 = vmatpush3.bf16.msra.mxu1 %v2348_v2  ;;  %s454_s23 = scalar_lea.vmem [#allocation11], %s3310_s6  ;;  %s2169_s17 = scalar_lea.sflag [#allocation4], %s3307_s2 }
  0xbf   : > { %2587 = vmatprep.subr.bf16.mxu0 %v3018_v0  ;;  %2590 = vmatprep.subr.bf16.mxu1 %v3018_v0  ;;  %s2182_s24 = sshll.u32 %s454_s23, 4  ;;  %p3611_p1 = scmp.ne.s32.totalorder %s3601_s20, 0  ;;  %s3525_s24 = int_to_ptr.vmem [resolvable:$true] %s2182_s24 }
  0xc0   : > { %s2931_s6 = scalar_lea.vmem %s3525_s24, 128  ;;  %s3023_s18 = smov [#allocation11]  }
  0xc1   : > { %2439 = vmatmul.mubr.msk.f32.vlgmr.msra.gmra.mrb[0].mxu0 %vm482_vm1, %v481_v3  ;;  %2446 = vmatmul.mubr.msk.f32.vlgmr.msra.gmra.mrb[0].mxu1 %vm482_vm1, %v556_v4  ;;  %p2932_p12 = scmp.ne.s32.totalorder %s3525_s24, %s2931_s6  ;;  %s2935_s26 = sshll.u32 %s3023_s18, 4  ;;  %s2936_s26 = int_to_ptr.vmem [resolvable:$false] %s2935_s26 }
  0xc2   : > { %2589 = vmatpush3.bf16.msra.mxu0 %v3342_v5  ;;  %2592 = vmatpush3.bf16.msra.mxu1 %v3345_v6  ;;  %s2937_s4 = scalar_lea.vmem %s2936_s26, 256  ;;  %p2938_p0 = scmp.lt.s32.totalorder %s3525_s24, %s2936_s26 }
  0xc3   : > { %2452 = vmatprep.mubr.msk.f32.mxu0 %vm3019_vm0, %v3020_v1  ;;  %2459 = vmatprep.mubr.msk.f32.mxu1 %vm3019_vm0, %v3020_v1  ;;  %p2933_p2 = pnand %p2932_p12, %p3611_p1  ;;  %p2939_p8 = scmp.lt.s32.totalorder %s2937_s4, %s2931_s6 }
  0xc4   : > { %2593 = vmatprep.subr.bf16.mxu0 %v3018_v0  ;;  %2596 = vmatprep.subr.bf16.mxu1 %v3018_v0 }
  0xc5   : > { %p2934_p4 = pneg %p2933_p2  ;;  %p2940_p6 = por %p2939_p8, %p2938_p0 }
  0xc7   : > { %p2941_p10 = pnand %p2940_p6, %p2934_p4 }
 0x194   : > { %v3359_v8 = vpop.f32.mrb[0].mxu0  ;;  %v3361_v9 = vpop.f32.mrb[0].mxu1 }
 0x195   : > { %v2440_v10 = vpop.f32.mrb[1].mxu0  ;;  %2453 = vmatmul.mubr.msk.f32.vlgmr.msra.gmra.mrb[2].mxu0 %vm482_vm1, %v3359_v8  ;;  %2460 = vmatmul.mubr.msk.f32.vlgmr.msra.gmra.mrb[2].mxu1 %vm482_vm1, %v3361_v9  ;;  %v2447_v11 = vpop.f32.mrb[1].mxu1 }
 0x196   : > { %2595 = vmatpush3.bf16.msra.mxu0 %v3357_v7  ;;  %2598 = vmatpush3.bf16.msra.mxu1 %v3357_v7 }
 0x197   : > { %2466 = vmatprep.mubr.msk.f32.mxu0 %vm3019_vm0, %v3020_v1  ;;  %2473 = vmatprep.mubr.msk.f32.mxu1 %vm3019_vm0, %v3020_v1 }
 0x198   : > { %2599 = vmatprep.subr.bf16.mxu0 %v3018_v0  ;;  %2602 = vmatprep.subr.bf16.mxu1 %v3018_v0 }
 0x268   : > { %v3375_v12 = vpop.f32.mrb[2].mxu0  ;;  %v3377_v13 = vpop.f32.mrb[2].mxu1 }
 0x269   : > { %v2454_v14 = vpop.f32.mrb[3].mxu0  ;;  %2467 = vmatmul.mubr.msk.f32.vlgmr.msra.gmra.mrb[4].mxu0 %vm482_vm1, %v3375_v12  ;;  %2474 = vmatmul.mubr.msk.f32.vlgmr.msra.gmra.mrb[4].mxu1 %vm482_vm1, %v3377_v13  ;;  %v776_v15 = vsel %vm482_vm1, %v3375_v12, 0.0  ;;  %v2461_v16 = vpop.f32.mrb[3].mxu1  ;;  %v779_v17 = vsel %vm482_vm1, %v3377_v13, 0.0 }
 0x26a   : > { %777 = vadd.xlane.f32.xlu0 %v776_v15  ;;  %2601 = vmatpush3.bf16.msra.mxu0 %v3357_v7 }
 0x26b   : > { %2604 = vmatpush3.bf16.msra.mxu1 %v3357_v7  ;;  %2480 = vmatprep.mubr.msk.f32.mxu0 %vm3019_vm0, %v3020_v1 }
 0x26c   : > { %2487 = vmatprep.mubr.msk.f32.mxu1 %vm3019_vm0, %v3020_v1  ;;  %2605 = vmatprep.subr.bf16.mxu0 %v3018_v0 }
 0x26d   : > { %2608 = vmatprep.subr.bf16.mxu1 %v3018_v0 }
 0x26e   : > { %780 = vadd.xlane.f32.xlu0 %v779_v17 }
 0x2f7   : > { %v3413_v46 = vpop.xlane.xlu0 %777 }
 0x2fb   : > { %v3415_v47 = vpop.xlane.xlu0 %780 }
 0x33c   : > { %v851_v18 = vpop.f32.mrb[4].mxu0  ;;  %v934_v19 = vpop.f32.mrb[4].mxu1 }
 0x33d   : > { %v855_v20 = vsub.f32 0.0, %v851_v18  ;;  %v938_v21 = vsub.f32 0.0, %v934_v19  ;;  %v2468_v22 = vpop.f32.mrb[5].mxu0  ;;  %v2475_v23 = vpop.f32.mrb[5].mxu1 }
 0x33f   : > { %v856_v24 = vmul.f32 1.442695, %v855_v20  ;;  %v939_v25 = vmul.f32 1.442695, %v938_v21 }
 0x341   : > { %2733 = vpow2.f32 %v856_v24 }
 0x342   : > { %2735 = vpow2.f32 %v939_v25 }
 0x34b   : > { %v2734_v26 = vpop.eup %2733 }
 0x34c   : > { %v2736_v27 = vpop.eup %2735  ;;  %v858_v28 = vadd.f32 1.0, %v2734_v26 }
 0x34d   : > { %v941_v29 = vadd.f32 1.0, %v2736_v27 }
 0x34e   : > { %2737 = vrcp.f32 %v858_v28 }
 0x34f   : > { %2739 = vrcp.f32 %v941_v29 }
 0x358   : > { %v2738_v30 = vpop.eup %2737 }
 0x359   : > { %v2740_v31 = vpop.eup %2739  ;;  %v860_v32 = vsub.f32 0.0, %v2738_v30 }
 0x35a   : > { %v943_v33 = vsub.f32 0.0, %v2740_v31 }
 0x35b   : > { %v861_v34 = vmul.f32 1.442695, %v860_v32 }
 0x35c   : > { %v944_v35 = vmul.f32 1.442695, %v943_v33 }
 0x35d   : > { %2741 = vpow2.f32 %v861_v34 }
 0x35e   : > { %2743 = vpow2.f32 %v944_v35 }
 0x367   : > { %v2742_v36 = vpop.eup %2741 }
 0x368   : > { %v2744_v37 = vpop.eup %2743  ;;  %v863_v38 = vadd.f32 1.0, %v2742_v36 }
 0x369   : > { %v946_v39 = vadd.f32 1.0, %v2744_v37 }
 0x36a   : > { %2745 = vrcp.f32 %v863_v38 }
 0x36b   : > { %2747 = vrcp.f32 %v946_v39 }
 0x374   : > { %v3395_v40 = vpop.eup %2745 }
 0x375   : > { %v3397_v41 = vpop.eup %2747  ;;  %v948_v42 = vsub.f32 1.0, %v3395_v40 }
 0x376   : > { %v950_v43 = vsub.f32 1.0, %v3397_v41 }
 0x377   : > { %v949_v44 = vmul.f32 %v3395_v40, %v948_v42 }
 0x378   : > { %v951_v45 = vmul.f32 %v3397_v41, %v950_v43 }
 0x379   : > { %2481 = vmatmul.mubr.msk.f32.vlgmr.msra.gmra.mrb[6].mxu0 %vm482_vm1, %v949_v44 }
 0x37a   : > { %2488 = vmatmul.mubr.msk.f32.vlgmr.msra.gmra.mrb[6].mxu1 %vm482_vm1, %v951_v45  ;;  %2607 = vmatpush3.bf16.msra.mxu0 %v3342_v5 }
 0x37b   : > { %2494 = vmatprep.mubr.msk.f32.mxu0 %vm3019_vm0, %v3020_v1  ;;  %2611 = vmatprep.subr.bf16.mxu0 %v3018_v0 }
 0x37c   : > { %2610 = vmatpush3.bf16.msra.mxu1 %v3357_v7  ;;  %2501 = vmatprep.mubr.msk.f32.mxu1 %vm3019_vm0, %v3020_v1 }
 0x37d   : > { %2614 = vmatprep.subr.bf16.mxu1 %v3018_v0 }
 0x44c   : > { %v1021_v48 = vpop.f32.mrb[6].mxu0 }
 0x44d   : > { %v1098_v49 = vsub.f32 0.0, %v1021_v48  ;;  %v1094_v50 = vpop.f32.mrb[6].mxu1  ;;  %v2482_v51 = vpop.f32.mrb[7].mxu0  ;;  %2495 = vmatmul.mubr.msk.f32.vlgmr.msra.gmra.mrb[8].mxu0 %vm482_vm1, %v1021_v48  ;;  %v1111_v56 = vmul.f32 %v1021_v48, %v3413_v46 }
 0x44e   : > { %v1108_v52 = vmul.f32 %v1094_v50, %v3415_v47  ;;  %2613 = vmatpush3.bf16.msra.mxu0 %v3345_v6  ;;  %v2489_v53 = vpop.f32.mrb[7].mxu1  ;;  %2508 = vmatprep.mubr.msk.f32.mxu0 %vm3019_vm0, %v3020_v1  ;;  %v1103_v2 = vsub.f32 0.0, %v1094_v50 }
 0x44f   : > { %v1099_v54 = vmul.f32 1.442695, %v1098_v49  ;;  %2617 = vmatprep.subr.bf16.mxu0 %v3018_v0 }
 0x450   : > { %v1109_v55 = vsub.f32 %v3397_v41, %v1108_v52  ;;  %v1104_v3 = vmul.f32 1.442695, %v1103_v2 }
 0x451   : > { %2749 = vpow2.f32 %v1099_v54  ;;  %2509 = vmatmul.mubr.msk.f32.vlgmr.msra.gmra.mrb[10].mxu0 %vm482_vm1, %v1094_v50 }
 0x452   : > { %v1110_v57 = vsub.f32 %v1109_v55, %v3395_v40  ;;  %2619 = vmatpush3.bf16.msra.mxu0 %v3342_v5  ;;  %2522 = vmatprep.mubr.msk.f32.mxu0 %vm3019_vm0, %v3020_v1 }
 0x453   : > { %2623 = vmatprep.subr.bf16.mxu0 %v3018_v0 }
 0x454   : > { %v1112_v58 = vadd.f32 %v1111_v56, %v1110_v57 }
 0x456   : > { %v2143_v59 = vmul.f32 %v1112_v58, %v1112_v58 }
 0x458   : > { %v2144_v60 = vsel %vm482_vm1, %v2143_v59, 0.0 }
 0x459   : > { %2145 = vadd.xlane.f32.xlu0 %v2144_v60 }
 0x45b   : > { %v2750_v61 = vpop.eup %2749 }
 0x45c   : > { %v1101_v62 = vadd.f32 1.0, %v2750_v61 }
 0x45e   : > { %2751 = vrcp.f32 %v1101_v62 }
 0x45f   : > { %2753 = vpow2.f32 %v1104_v3 }
 0x468   : > { %v2752_v63 = vpop.eup %2751 }
 0x469   : > { %2523 = vmatmul.mubr.msk.f32.vlgmr.msra.gmra.mrb[12].mxu0 %vm482_vm1, %v2752_v63  ;;  %v2754_v4 = vpop.eup %2753 }
 0x46a   : > { %2625 = vmatpush3.bf16.msra.mxu0 %v3357_v7  ;;  %2536 = vmatprep.mubr.msk.f32.mxu0 %vm3019_vm0, %v3020_v1  ;;  %v1106_v5 = vadd.f32 1.0, %v2754_v4 }
 0x46b   : > { %2629 = vmatprep.subr.bf16.mxu0 %v3018_v0 }
 0x46c   : > { %2755 = vrcp.f32 %v1106_v5 }
 0x46f   : > { %2159 = vrot.lane.b32.xlu0 %v1112_v58, %s3021_s30  ;;  %s3610_s30 = sld [smem:[#allocation23_spill]] }
 0x475   : > { %s3523_s12 = scalar_lea.hbm %s3610_s30, %s2344_s21 }
 0x476   : > { %v2756_v16 = vpop.eup %2755 }
 0x520   : > { %v1182_v10 = vpop.f32.mrb[8].mxu0 }
 0x521   : > { %v2496_v11 = vpop.f32.mrb[9].mxu0  ;;  %2502 = vmatmul.mubr.msk.f32.vlgmr.msra.gmra.mrb[8].mxu1 %vm482_vm1, %v1182_v10 }
 0x522   : > { %2616 = vmatpush3.bf16.msra.mxu1 %v3357_v7  ;;  %2515 = vmatprep.mubr.msk.f32.mxu1 %vm3019_vm0, %v3020_v1 }
 0x523   : > { %2620 = vmatprep.subr.bf16.mxu1 %v3018_v0 }
 0x524   : > { %v1333_v14 = vpop.f32.mrb[10].mxu0 }
 0x525   : > { %v2510_v15 = vpop.f32.mrb[11].mxu0  ;;  %2516 = vmatmul.mubr.msk.f32.vlgmr.msra.gmra.mrb[10].mxu1 %vm482_vm1, %v1333_v14 }
 0x526   : > { %2622 = vmatpush3.bf16.msra.mxu1 %v3345_v6  ;;  %2529 = vmatprep.mubr.msk.f32.mxu1 %vm3019_vm0, %v3020_v1 }
 0x527   : > { %2626 = vmatprep.subr.bf16.mxu1 %v3018_v0 }
 0x529   : > { %2530 = vmatmul.mubr.msk.f32.vlgmr.msra.gmra.mrb[12].mxu1 %vm482_vm1, %v2756_v16 }
 0x52a   : > { %2628 = vmatpush3.bf16.msra.mxu1 %v3357_v7  ;;  %2543 = vmatprep.mubr.msk.f32.mxu1 %vm3019_vm0, %v3020_v1 }
 0x52b   : > { %2632 = vmatprep.subr.bf16.mxu1 %v3018_v0 }
 0x53c   : > { %v3452_v17 = vpop.f32.mrb[12].mxu0 }
 0x53d   : > { %v2524_v18 = vpop.f32.mrb[13].mxu0 }
 0x5f4   : > { %v1255_v19 = vpop.f32.mrb[8].mxu1 }
 0x5f5   : > { %v1259_v6 = vsub.f32 0.0, %v1255_v19  ;;  %v2503_v20 = vpop.f32.mrb[9].mxu1  ;;  %v2360_v19 = vld [vmem:[%s3572_s5] sm:$0xff]  }
 0x5f7   : > { %v1260_v21 = vmul.f32 1.442695, %v1259_v6 }
 0x5f8   : > { %v1406_v22 = vpop.f32.mrb[10].mxu1 }
 0x5f9   : > { %2757 = vpow2.f32 %v1260_v21  ;;  %v1410_v23 = vsub.f32 0.0, %v1406_v22  ;;  %v2517_v24 = vpop.f32.mrb[11].mxu1  ;;  %v2116_v21 = vmul.f32 2.0, %v3413_v46 }
 0x5fb   : > { %v1411_v25 = vmul.f32 1.442695, %v1410_v23 }
 0x5fc   : > { %v3454_v26 = vpop.f32.mrb[12].mxu1 }
 0x5fd   : > { %2759 = vpow2.f32 %v1411_v25  ;;  %v2531_v27 = vpop.f32.mrb[13].mxu1 }
 0x603   : > { %v2758_v28 = vpop.eup %2757 }
 0x604   : > { %v1262_v29 = vadd.f32 1.0, %v2758_v28 }
 0x606   : > { %2761 = vrcp.f32 %v1262_v29 }
 0x607   : > { %v2760_v30 = vpop.eup %2759 }
 0x608   : > { %v1413_v31 = vadd.f32 1.0, %v2760_v30 }
 0x60a   : > { %2763 = vrcp.f32 %v1413_v31 }
 0x610   : > { %v3456_v32 = vpop.eup %2761 }
 0x611   : > { %v1561_v33 = vmul.f32 %v3456_v32, %v3395_v40  ;;  %v1877_v3 = vsub.f32 0.0, %v3456_v32 }
 0x613   : > { %2544 = vmatmul.mubr.msk.f32.vlgmr.msra.gmra.mrb[14].mxu1 %vm482_vm1, %v1561_v33  ;;  %v1563_v34 = vsub.f32 %v3456_v32, %v1561_v33  ;;  %v1878_v11 = vadd.f32 %v1877_v3, %v3452_v17 }
 0x614   : > { %v3462_v35 = vpop.eup %2763  ;;  %2634 = vmatpush3.bf16.msra.mxu1 %v3357_v7  ;;  %2557 = vmatprep.mubr.msk.f32.mxu1 %vm3019_vm0, %v3020_v1 }
 0x615   : > { %v1882_v36 = vsub.f32 %v3462_v35, %v3454_v26  ;;  %2537 = vmatmul.mubr.msk.f32.vlgmr.msra.gmra.mrb[14].mxu0 %vm482_vm1, %v1563_v34  ;;  %v1562_v37 = vmul.f32 %v3462_v35, %v3397_v41  ;;  %2638 = vmatprep.subr.bf16.mxu1 %v3018_v0 }
 0x616   : > { %2631 = vmatpush3.bf16.msra.mxu0 %v3357_v7  ;;  %2550 = vmatprep.mubr.msk.f32.mxu0 %vm3019_vm0, %v3020_v1  ;;  %v2368_v7 = vld [vmem:[%s3574_s7] sm:$0xff]  }
 0x617   : > { %2558 = vmatmul.mubr.msk.f32.vlgmr.msra.gmra.mrb[16].mxu1 %vm482_vm1, %v1562_v37  ;;  %v1720_v38 = vsub.f32 %v3462_v35, %v1562_v37  ;;  %2635 = vmatprep.subr.bf16.mxu0 %v3018_v0  ;;  %v2146_v37 = vpop.xlane.xlu0 %2145 }
 0x618   : > { %2571 = vmatprep.mubr.msk.f32.mxu1 %vm3019_vm0, %v3020_v1  ;;  %2640 = vmatpush3.bf16.msra.mxu1 %v2368_v7  ;;  %vm2149_vm3 = vcmp.eq.f32.partialorder %v2146_v37, inf  ;;  %vm2151_vm7 = vcmp.eq.f32.partialorder %v2146_v37, 0.0 }
 0x619   : > { %2551 = vmatmul.mubr.msk.f32.vlgmr.msra.gmra.mrb[16].mxu0 %vm482_vm1, %v1720_v38 }
 0x61a   : > { %2564 = vmatprep.mubr.msk.f32.mxu0 %vm3019_vm0, %v3020_v1  ;;  %2637 = vmatpush3.bf16.msra.mxu0 %v2368_v7 }
 0x61b   : > { %2641 = vmatprep.subr.bf16.mxu0 %v3018_v0 }
 0x6e6   : > { %v1711_v39 = vpop.f32.mrb[14].mxu1 }
 0x6e7   : > { %v1715_v40 = vsub.f32 0.0, %v1711_v39  ;;  %v2545_v41 = vpop.f32.mrb[15].mxu1 }
 0x6e8   : > { %v1633_v42 = vpop.f32.mrb[14].mxu0 }
 0x6e9   : > { %v1716_v43 = vmul.f32 1.442695, %v1715_v40  ;;  %v1637_v44 = vsub.f32 0.0, %v1633_v42  ;;  %v2538_v45 = vpop.f32.mrb[15].mxu0 }
 0x6ea   : > { %v1868_v48 = vpop.f32.mrb[16].mxu1 }
 0x6eb   : > { %2765 = vpow2.f32 %v1716_v43  ;;  %v1638_v49 = vmul.f32 1.442695, %v1637_v44  ;;  %v1872_v50 = vsub.f32 0.0, %v1868_v48  ;;  %v2559_v51 = vpop.f32.mrb[17].mxu1 }
 0x6ec   : > { %v1790_v52 = vpop.f32.mrb[16].mxu0 }
 0x6ed   : > { %2767 = vpow2.f32 %v1638_v49  ;;  %v1873_v53 = vmul.f32 1.442695, %v1872_v50  ;;  %v1794_v54 = vsub.f32 0.0, %v1790_v52  ;;  %v2552_v55 = vpop.f32.mrb[17].mxu0  ;;  %v2152_v50 = vand.u32 2147483648, %v2146_v37 }
 0x6ef   : > { %2769 = vpow2.f32 %v1873_v53  ;;  %v1795_v56 = vmul.f32 1.442695, %v1794_v54 }
 0x6f1   : > { %2771 = vpow2.f32 %v1795_v56  ;;  %v2160_v56 = vpop.permute.xlu0 %2159 }
 0x6f5   : > { %v2766_v0 = vpop.eup %2765 }
 0x6f6   : > { %v1718_v57 = vadd.f32 1.0, %v2766_v0 }
 0x6f7   : > { %v2768_v58 = vpop.eup %2767 }
 0x6f8   : > { %v1640_v59 = vadd.f32 1.0, %v2768_v58  ;;  %2773 = vrcp.f32 %v1718_v57 }
 0x6f9   : > { %v2770_v60 = vpop.eup %2769 }
 0x6fa   : > { %2775 = vrcp.f32 %v1640_v59  ;;  %v1875_v61 = vadd.f32 1.0, %v2770_v60 }
 0x6fb   : > { %v2772_v62 = vpop.eup %2771 }
 0x6fc   : > { %v1797_v63 = vadd.f32 1.0, %v2772_v62  ;;  %2777 = vrcp.f32 %v1875_v61 }
 0x6fe   : > { %2779 = vrcp.f32 %v1797_v63 }
 0x6ff   : > { %2781 = vrsqrt.f32 %v2146_v37 }
 0x702   : > { %v2774_v2 = vpop.eup %2773 }
 0x704   : > { %v2776_v4 = vpop.eup %2775 }
 0x705   : > { %v1879_v5 = vsub.f32 %v2776_v4, %v2774_v2 }
 0x706   : > { %v2778_v10 = vpop.eup %2777 }
 0x707   : > { %v1880_v14 = vmul.f32 %v1879_v5, %v3413_v46 }
 0x708   : > { %v2780_v15 = vpop.eup %2779 }
 0x709   : > { %v1883_v16 = vsub.f32 %v2780_v15, %v2778_v10  ;;  %v1881_v18 = vadd.f32 %v1880_v14, %v1878_v11 }
 0x70b   : > { %2565 = vmatmul.mubr.msk.f32.vlgmr.msra.gmra.mrb[18].mxu0 %vm482_vm1, %v1881_v18  ;;  %v1884_v6 = vmul.f32 %v1883_v16, %v3415_v47  ;;  %v2342_v47 = vld [vmem:[%s3576_s9] ss:$0 sm:$0xff] }
 0x70c   : > { %2643 = vmatpush3.bf16.msra.mxu0 %v2360_v19  ;;  %2578 = vmatprep.mubr.msk.f32.mxu0 %vm3019_vm0, %v3020_v1  ;;  %v2338_v1 = vld [vmem:[%s3609_s11] ss:$0 sm:$0xff] }
 0x70d   : > { %v1885_v17 = vsub.f32 %v1882_v36, %v1884_v6 }
 0x70f   : > { %2572 = vmatmul.mubr.msk.f32.vlgmr.msra.gmra.mrb[18].mxu1 %vm482_vm1, %v1885_v17  ;;  %2579 = vmatmul.mubr.msk.f32.vlgmr.msra.gmra.mrb[20].mxu0 %vm482_vm1, %v3375_v12  ;;  %v2117_v12 = vmul.f32 %v2116_v21, %v3377_v13 }
 0x7de   : > { %v1961_v20 = vpop.f32.mrb[18].mxu0 }
 0x7df   : > { %v2566_v22 = vpop.f32.mrb[19].mxu0  ;;  %v1962_v29 = vadd.f32 %v2338_v1, %v1961_v20 }
 0x7e2   : > { %v2034_v23 = vpop.f32.mrb[18].mxu1  ;;  %v2104_v24 = vpop.f32.mrb[20].mxu0 }
 0x7e3   : > { %v2035_v25 = vadd.f32 %v2338_v1, %v2034_v23  ;;  %v2114_v26 = vadd.f32 %v2342_v47, %v2104_v24  ;;  %v2573_v27 = vpop.f32.mrb[19].mxu1  ;;  %v2580_v28 = vpop.f32.mrb[21].mxu0 }
 0x7e5   : > { %v2115_v46 = vsub.f32 %v2114_v26, %v3456_v32  ;;  %v2130_v30 = vadd.f32 %v2117_v12, %v2035_v25  ;;  %v2782_v32 = vpop.eup %2781 }
 0x7e6   : > { %v2148_v40 = vmul.f32 %v2782_v32, %v2146_v37 }
 0x7e7   : > { %v2131_v31 = vmul.f32 %v2130_v30, %v2130_v30  ;;  %v2118_v33 = vadd.f32 %v2115_v46, %v1962_v29 }
 0x7e8   : > { %v2150_v48 = vsel %vm2149_vm3, %v2146_v37, %v2148_v40 }
 0x7e9   : > { %v2132_v34 = vsel %vm482_vm1, %v2131_v31, 0.0  ;;  %v2119_v35 = vmul.f32 %v2118_v33, %v2118_v33  ;;  %v2153_v55 = vsel %vm2151_vm7, %v2152_v50, %v2150_v48 }
 0x7ea   : > { %2133 = vadd.xlane.f32.xlu1 %v2132_v34 }
 0x7eb   : > { %v2120_v36 = vsel %vm482_vm1, %v2119_v35, 0.0 }
 0x7ee   : > { %2121 = vadd.xlane.f32.xlu1 %v2120_v36 }
 0x7ff   : > { %2155 = vrot.lane.b32.xlu1 %v3361_v9, %s3022_s27 }
 0x877   : > { %v2134_v38 = vpop.xlane.xlu1 %2133 }
 0x878   : > { %2783 = vrsqrt.f32 %v2134_v38  ;;  %vm2137_vm2 = vcmp.eq.f32.partialorder %v2134_v38, inf  ;;  %v2140_v44 = vand.u32 2147483648, %v2134_v38  ;;  %vm2139_vm5 = vcmp.eq.f32.partialorder %v2134_v38, 0.0 }
 0x87b   : > { %v2122_v13 = vpop.xlane.xlu1 %2121 }
 0x87c   : > { %2785 = vrsqrt.f32 %v2122_v13  ;;  %vm2125_vm4 = vcmp.eq.f32.partialorder %v2122_v13, inf  ;;  %v2128_v9 = vand.u32 2147483648, %v2122_v13  ;;  %vm2127_vm6 = vcmp.eq.f32.partialorder %v2122_v13, 0.0 }
 0x87f   : > { %v2156_v45 = vpop.permute.xlu1 %2155 }
 0x880   : > { %v2162_v54 = vsel %vm482_vm1, %v3359_v8, %v2156_v45 }
 0x881   : > { %v2164_v57 = vsel %vm2163_vm8, %v2162_v54, %v2160_v56 }
 0x882   : > { %v2784_v7 = vpop.eup %2783 }
 0x883   : > { %v2136_v39 = vmul.f32 %v2784_v7, %v2134_v38 }
 0x885   : > { %v2138_v42 = vsel %vm2137_vm2, %v2134_v38, %v2136_v39 }
 0x886   : > { %v2786_v41 = vpop.eup %2785  ;;  %v2141_v52 = vsel %vm2139_vm5, %v2140_v44, %v2138_v42 }
 0x887   : > { %v2124_v43 = vmul.f32 %v2786_v41, %v2122_v13 }
 0x889   : > { %v2126_v49 = vsel %vm2125_vm4, %v2122_v13, %v2124_v43 }
 0x88a   : > { %v2129_v51 = vsel %vm2127_vm6, %v2128_v9, %v2126_v49 }
 0x88b   : > { %v2142_v53 = vadd.f32 %v2141_v52, %v2129_v51 }
 0x88d   : > { %v2154_v0 = vadd.f32 %v2153_v55, %v2142_v53 }
 0x88f   : > { %v2166_v8 = vsel %vm2165_vm9, %v2164_v57, %v2154_v0 }
 0x890   : > { %2167 = vst [vmem:[%s454_s23] sm:$0xff] %v2166_v8 }
 0x891   : > { %2944 = shalt.err (!%p2941_p10)
}
 0x892   : > { %s2945_s2 = scalar_lea.hbm %s3523_s12, 128  ;;  %s2949_s29 = scalar_lea.hbm %s3610_s30, 256 }
 0x893   : > { %p2946_p13 = scmp.ne.s32.totalorder %s3523_s12, %s2945_s2  ;;  %p2950_p9 = scmp.lt.u32.totalorder %s3523_s12, %s3610_s30 }
 0x894   : > { %p2951_p3 = scmp.lt.u32.totalorder %s2949_s29, %s2945_s2  ;;  %p2953_p12 = scmp.lt.u32.totalorder %s2945_s2, %s3523_s12 }
 0x895   : > { %p2947_p5 = pnand %p2946_p13, %p3611_p1 }
 0x896   : > { %p2952_p7 = por %p2951_p3, %p2950_p9 }
 0x897   : > { %p2948_p11 = pneg %p2947_p5 }
 0x898   : > { %p2954_p2 = por %p2953_p12, %p2952_p7 }
 0x89a   : > { %p2955_p4 = pnand %p2954_p2, %p2948_p11 }
 0x89c   : > { %2958 = shalt.err (!%p2955_p4)
}
 0x89d   : > { %2660 = dma.vmem_to_hbm [thread:$0]  (%p3611_p1), %s3525_s24, 128, %s3523_s12, %s2169_s17  }
 0x89e PF: > { %s3612_s27 = sld [smem:[#allocation17_spill]]  ;;  %s3613_s21 = sld [smem:[#allocation18_spill]] }
 0x89f   : > { %p3615_p8 = scmp.ge.s32.totalorder %s3009_s16, 2 }
 0x8a4   : > { %s2194_s23 = sand.u32 1, %s3612_s27   ;;  %p3614_p0 = scmp.ne.s32.totalorder %s3613_s21, 0 }
 0x8a5   : > { %s2195_s19 = scalar_lea.sflag [#allocation4], %s2194_s23 }
 0x8a6   : > { %p2680_p6 = pnand %p3615_p8, %p3614_p0 }
 0x8a8   : > { %2992 = dma.done.wait (!%p2680_p6), %s2195_s19, 128  }
 0x8a9   : > { %2994 = vsyncadd (!%p2680_p6), %s2195_s19, 4294967168  ;;  %s3616_s8 = smov %s3229_s13  ;;  %p27_p10 = scmp.ge.s32.totalorder %s3219_s22, 4  }
 0x8aa   : > { %s3617_s13 = smov %s3001_s14  ;;  %s3618_s14 = smov %s3005_s15 }
 0x8ab   : > { %s3619_s15 = smov %s3616_s8  ;;  %s3620_s16 = smov %s3219_s22 }
 0x8ac   :  { %29 = sbr.rel (!%p27_p10) target bundleno = 14 (0xe), region = 130 }
 0x8b3   :  { %2200 = vsyncpa [#allocation3], 1 }
 0x8b4   :  { %2202 = vsyncpa [#allocation3 + $0x1], 1 }
 0x8b5   :  { %2203 = vsyncpa [#allocation6], 1 }
 0x8b6   :  { %2205 = vsyncpa [#allocation6 + $0x1], 1 }
 0x8b7   :  { %2206 = vsyncpa [#allocation9], 1 }
 0x8b8   :  { %2207 = vsyncpa [#allocation4], 1 }
 0x8b9   :  { %2209 = vsyncpa [#allocation4 + $0x1], 1 }

</bundles_post_ra>
